<compile_context>
chip_gen: v6e
topology: v6e:2x2x1
jax: 0.10.0
libtpu: 0.0.40
codegen_flags: <defaults>
</compile_context>

<pallas_src>
import jax
import jax.numpy as jnp
from jax.experimental import pallas as pl
from jax.experimental.pallas import tpu as pltpu


def _autoencoder_kernel(x_ref,
                        w1_ref, b1_ref,
                        w2_ref, b2_ref,
                        w3_ref, b3_ref,
                        w4_ref, b4_ref,
                        out_ref):
    cdt = w1_ref.dtype                         # MXU compute dtype (bf16 or f32)
    x = x_ref[...].astype(cdt)                 # (TB, D_in)

    # ----- encoder -----
    h1 = jnp.dot(x, w1_ref[...], preferred_element_type=jnp.float32) + b1_ref[...]
    h1 = jnp.maximum(h1, 0.0).astype(cdt)                       # ReLU, f32 -> cdt
    z = jnp.dot(h1, w2_ref[...], preferred_element_type=jnp.float32) + b2_ref[...]
    z = z.astype(cdt)

    # ----- decoder -----
    h2 = jnp.dot(z, w3_ref[...], preferred_element_type=jnp.float32) + b3_ref[...]
    h2 = jnp.maximum(h2, 0.0).astype(cdt)                       # ReLU
    y = jnp.dot(h2, w4_ref[...], preferred_element_type=jnp.float32) + b4_ref[...]

    out_ref[...] = y.astype(out_ref.dtype)


def _round_up(x, m):
    return (x + m - 1) // m * m


def _choose_tb(B, batch_tile):
    """Pick the batch tile: prefer >=2 grid steps (megacore + pipeline overlap),
    then minimal batch-padding waste, then the biggest tile (per-step overhead)."""
    if B <= 128:
        return _round_up(max(B, 8), 8)
    candidates = [c for c in (128, 256, 512, 1024, 2048) if c <= batch_tile]
    if not candidates:
        candidates = [_round_up(min(B, max(batch_tile, 8)), 8)]

    def score(tb):
        b_pad = _round_up(B, tb)
        steps = b_pad // tb
        return (0 if steps >= 2 else 1, b_pad - B, -tb)

    return min(candidates, key=score)


def prepare_params(params, *, compute_dtype=jnp.bfloat16):
    """One-time prep (hoisted out of the per-call hot path):
      * pad w4/b4 columns so the kernel OUTPUT is lane-dense (multiple of 128),
      * cast weights to the MXU compute dtype (biases stay f32 for the f32
        bias-add / ReLU epilogue).
    Returns (prepped_params, d_in, d_out_pad)."""
    d_in = params["w4"].shape[1]
    d_out_pad = _round_up(max(d_in, 128), 128)
    pad = d_out_pad - d_in
    w4 = jnp.pad(params["w4"], ((0, 0), (0, pad))) if pad else params["w4"]
    b4 = jnp.pad(params["b4"], ((0, 0), (0, pad))) if pad else params["b4"]
    prepped = {
        "w1": params["w1"].astype(compute_dtype),
        "b1": params["b1"].astype(jnp.float32),
        "w2": params["w2"].astype(compute_dtype),
        "b2": params["b2"].astype(jnp.float32),
        "w3": params["w3"].astype(compute_dtype),
        "b3": params["b3"].astype(jnp.float32),
        "w4": w4.astype(compute_dtype),
        "b4": b4.astype(jnp.float32),
    }
    return prepped, d_in, d_out_pad


def state_autoencoder_forward(x, prepped, d_in, d_out_pad, *, batch_tile=1024):
    """x: (B, d_in) float32.  prepped: output of prepare_params."""
    B, D = x.shape
    assert D == d_in, f"expected input_dim={d_in}, got {D}"
    hidden = prepped["w1"].shape[1]
    latent = prepped["w2"].shape[1]

    TB = _choose_tb(B, batch_tile)
    B_pad = _round_up(B, TB)

    # Only batch rows ever get padded (garbage rows are sliced off below);
    # the feature dim of x is passed through unpadded (it equals the full dim).
    x_p = x if B_pad == B else jnp.pad(x, ((0, B_pad - B), (0, 0)))

    args = (x_p,
            prepped["w1"], prepped["b1"],
            prepped["w2"], prepped["b2"],
            prepped["w3"], prepped["b3"],
            prepped["w4"], prepped["b4"])

    # Batch-tiled specs for x / out; constant-index specs keep weights resident
    # in VMEM across all grid steps.
    x_spec = pl.BlockSpec((TB, D), lambda i: (i, 0))
    out_spec = pl.BlockSpec((TB, d_out_pad), lambda i: (i, 0))
    const_spec = lambda a: pl.BlockSpec(a.shape, lambda i, _n=a.ndim: (0,) * _n)
    in_specs = [x_spec] + [const_spec(a) for a in args[1:]]

    flops = 2 * B_pad * (D * hidden + hidden * latent
                         + latent * hidden + hidden * d_out_pad)
    bytes_accessed = (sum(int(a.size) * a.dtype.itemsize for a in args)
                      + B_pad * d_out_pad * x.dtype.itemsize)

    out_p = pl.pallas_call(
        _autoencoder_kernel,
        out_shape=jax.ShapeDtypeStruct((B_pad, d_out_pad), x.dtype),
        grid=(B_pad // TB,),
        in_specs=in_specs,
        out_specs=out_spec,
        compiler_params=pltpu.CompilerParams(
            # Batch axis is embarrassingly parallel -> megacore sharding on v7x.
            # (If profiling shows "parallel" doesn't split across the two TCs,
            # switch to pltpu.CORE_PARALLEL.)
            dimension_semantics=("parallel",),
        ),
        cost_estimate=pl.CostEstimate(
            flops=flops, transcendentals=0, bytes_accessed=bytes_accessed),
    )(*args)

    return out_p[:B, :d_in]


def init_params(key, input_dim, latent_dim, hidden=128, dtype=jnp.float32):
    """Deterministic init, PyTorch-Linear-style uniform(-1/sqrt(fan_in), 1/sqrt(fan_in)).
    Weights stored as (in_features, out_features)."""
    dims = [(input_dim, hidden), (hidden, latent_dim),
            (latent_dim, hidden), (hidden, input_dim)]
    params = {}
    for i, (fan_in, fan_out) in enumerate(dims, start=1):
        key, kw, kb = jax.random.split(key, 3)
        bound = 1.0 / jnp.sqrt(jnp.float32(fan_in))
        params[f"w{i}"] = jax.random.uniform(kw, (fan_in, fan_out), dtype, -bound, bound)
        params[f"b{i}"] = jax.random.uniform(kb, (1, fan_out), dtype, -bound, bound)
    return params


def reference_forward(x, p, compute_dtype=None):
    """Pure-JAX reference.  compute_dtype=bf16 mirrors the kernel's MXU casting."""
    def lin(a, w, b):
        if compute_dtype is not None:
            a = a.astype(compute_dtype)
            w = w.astype(compute_dtype)
        return jnp.dot(a, w, preferred_element_type=jnp.float32) + b
    h1 = jnp.maximum(lin(x, p["w1"], p["b1"]), 0.0)
    z = lin(h1, p["w2"], p["b2"])
    h2 = jnp.maximum(lin(z, p["w3"], p["b3"]), 0.0)
    return lin(h2, p["w4"], p["b4"])


if __name__ == "__main__":
    input_dim = 64      # stands in for sample_data.shape[1]
    latent_dim = 512

    key = jax.random.PRNGKey(0)
    key, kx1, kx2 = jax.random.split(key, 3)
    params = init_params(key, input_dim, latent_dim)
    prepped, d_in, d_out_pad = prepare_params(params, compute_dtype=jnp.bfloat16)

    # Small batch (single-tile path, batch rows padded to a multiple of 8).
    x_small = jax.random.normal(kx1, (8, input_dim), dtype=jnp.float32)
    out_small = jax.block_until_ready(
        state_autoencoder_forward(x_small, prepped, d_in, d_out_pad))
    assert out_small.shape == x_small.shape
    ref_bf16 = reference_forward(x_small, params, compute_dtype=jnp.bfloat16)
    ref_f32 = reference_forward(x_small, params)
    assert jnp.allclose(out_small, ref_bf16, atol=1e-2, rtol=1e-2), \
        "mismatch vs. bf16-matched reference (small batch)"
    assert jnp.allclose(out_small, ref_f32, atol=5e-2, rtol=5e-2), \
        "mismatch vs. f32 reference (small batch)"

    # Larger, non-multiple batch (multi-step pipelined grid; TB=128 -> pads 300->384).
    x_big = jax.random.normal(kx2, (300, input_dim), dtype=jnp.float32)
    out_big = jax.block_until_ready(
        state_autoencoder_forward(x_big, prepped, d_in, d_out_pad))
    assert out_big.shape == x_big.shape
    ref_bf16 = reference_forward(x_big, params, compute_dtype=jnp.bfloat16)
    ref_f32 = reference_forward(x_big, params)
    assert jnp.allclose(out_big, ref_bf16, atol=1e-2, rtol=1e-2), \
        "mismatch vs. bf16-matched reference (large batch)"
    assert jnp.allclose(out_big, ref_f32, atol=5e-2, rtol=5e-2), \
        "mismatch vs. f32 reference (large batch)"

    print("KERNEL_OK")
</pallas_src>

<mosaic_0001>
module attributes {stable_mosaic.version = 11 : i64} {
  func.func @_autoencoder_kernel(%arg0: i32, %arg1: memref<8x64xf32, #tpu.memory_space<vmem>>, %arg2: memref<64x128xbf16, #tpu.memory_space<vmem>>, %arg3: memref<1x128xf32, #tpu.memory_space<vmem>>, %arg4: memref<128x512xbf16, #tpu.memory_space<vmem>>, %arg5: memref<1x512xf32, #tpu.memory_space<vmem>>, %arg6: memref<512x128xbf16, #tpu.memory_space<vmem>>, %arg7: memref<1x128xf32, #tpu.memory_space<vmem>>, %arg8: memref<128x128xbf16, #tpu.memory_space<vmem>>, %arg9: memref<1x128xf32, #tpu.memory_space<vmem>>, %arg10: memref<8x128xf32, #tpu.memory_space<vmem>>) attributes {dimension_semantics = [#tpu.dimension_semantics<parallel>], iteration_bounds = array<i64: 1>, scalar_prefetch = 0 : i64, scratch_operands = 0 : i64, tpu.core_type = #tpu.core_type<tc>, window_params = [{transform_indices = @transform_0, window_bounds = array<i64: 8, 64>}, {pipeline_mode = #tpu.pipeline_mode<synchronous>, transform_indices = @transform_1, window_bounds = array<i64: 64, 128>}, {pipeline_mode = #tpu.pipeline_mode<synchronous>, transform_indices = @transform_2, window_bounds = array<i64: 1, 128>}, {pipeline_mode = #tpu.pipeline_mode<synchronous>, transform_indices = @transform_3, window_bounds = array<i64: 128, 512>}, {pipeline_mode = #tpu.pipeline_mode<synchronous>, transform_indices = @transform_4, window_bounds = array<i64: 1, 512>}, {pipeline_mode = #tpu.pipeline_mode<synchronous>, transform_indices = @transform_5, window_bounds = array<i64: 512, 128>}, {pipeline_mode = #tpu.pipeline_mode<synchronous>, transform_indices = @transform_6, window_bounds = array<i64: 1, 128>}, {pipeline_mode = #tpu.pipeline_mode<synchronous>, transform_indices = @transform_7, window_bounds = array<i64: 128, 128>}, {pipeline_mode = #tpu.pipeline_mode<synchronous>, transform_indices = @transform_8, window_bounds = array<i64: 1, 128>}, {transform_indices = @transform_9, window_bounds = array<i64: 8, 128>}]} {
    %c0 = arith.constant 0 : index
    %c0_0 = arith.constant 0 : index
    %0 = vector.load %arg1[%c0, %c0_0] : memref<8x64xf32, #tpu.memory_space<vmem>>, vector<8x64xf32>
    %1 = arith.truncf %0 : vector<8x64xf32> to vector<8x64xbf16>
    %c0_1 = arith.constant 0 : index
    %c0_2 = arith.constant 0 : index
    %2 = vector.load %arg2[%c0_1, %c0_2] : memref<64x128xbf16, #tpu.memory_space<vmem>>, vector<64x128xbf16>
    %cst = arith.constant dense<0.000000e+00> : vector<8x128xf32>
    %3 = tpu.matmul %1, %2, %cst {dimension_numbers = #tpu.dot_dimension_numbers<[1], [0], [0], [1], [0, 0, 1, 1], [], []>} : vector<8x64xbf16>, vector<64x128xbf16>, vector<8x128xf32> -> vector<8x128xf32>
    %c0_3 = arith.constant 0 : index
    %c0_4 = arith.constant 0 : index
    %4 = vector.load %arg3[%c0_3, %c0_4] : memref<1x128xf32, #tpu.memory_space<vmem>>, vector<1x128xf32>
    %5 = vector.broadcast %4 : vector<1x128xf32> to vector<8x128xf32>
    %6 = arith.addf %3, %5 : vector<8x128xf32>
    %cst_5 = arith.constant 0.000000e+00 : f32
    %7 = vector.broadcast %cst_5 : f32 to vector<8x128xf32>
    %8 = arith.maximumf %6, %7 : vector<8x128xf32>
    %9 = arith.truncf %8 : vector<8x128xf32> to vector<8x128xbf16>
    %c0_6 = arith.constant 0 : index
    %c0_7 = arith.constant 0 : index
    %10 = vector.load %arg4[%c0_6, %c0_7] : memref<128x512xbf16, #tpu.memory_space<vmem>>, vector<128x512xbf16>
    %cst_8 = arith.constant dense<0.000000e+00> : vector<8x512xf32>
    %11 = tpu.matmul %9, %10, %cst_8 {dimension_numbers = #tpu.dot_dimension_numbers<[1], [0], [0], [1], [0, 0, 1, 1], [], []>} : vector<8x128xbf16>, vector<128x512xbf16>, vector<8x512xf32> -> vector<8x512xf32>
    %c0_9 = arith.constant 0 : index
    %c0_10 = arith.constant 0 : index
    %12 = vector.load %arg5[%c0_9, %c0_10] : memref<1x512xf32, #tpu.memory_space<vmem>>, vector<1x512xf32>
    %13 = vector.broadcast %12 : vector<1x512xf32> to vector<8x512xf32>
    %14 = arith.addf %11, %13 : vector<8x512xf32>
    %15 = arith.truncf %14 : vector<8x512xf32> to vector<8x512xbf16>
    %c0_11 = arith.constant 0 : index
    %c0_12 = arith.constant 0 : index
    %16 = vector.load %arg6[%c0_11, %c0_12] : memref<512x128xbf16, #tpu.memory_space<vmem>>, vector<512x128xbf16>
    %cst_13 = arith.constant dense<0.000000e+00> : vector<8x128xf32>
    %17 = tpu.matmul %15, %16, %cst_13 {dimension_numbers = #tpu.dot_dimension_numbers<[1], [0], [0], [1], [0, 0, 1, 1], [], []>} : vector<8x512xbf16>, vector<512x128xbf16>, vector<8x128xf32> -> vector<8x128xf32>
    %c0_14 = arith.constant 0 : index
    %c0_15 = arith.constant 0 : index
    %18 = vector.load %arg7[%c0_14, %c0_15] : memref<1x128xf32, #tpu.memory_space<vmem>>, vector<1x128xf32>
    %19 = vector.broadcast %18 : vector<1x128xf32> to vector<8x128xf32>
    %20 = arith.addf %17, %19 : vector<8x128xf32>
    %cst_16 = arith.constant 0.000000e+00 : f32
    %21 = vector.broadcast %cst_16 : f32 to vector<8x128xf32>
    %22 = arith.maximumf %20, %21 : vector<8x128xf32>
    %23 = arith.truncf %22 : vector<8x128xf32> to vector<8x128xbf16>
    %c0_17 = arith.constant 0 : index
    %c0_18 = arith.constant 0 : index
    %24 = vector.load %arg8[%c0_17, %c0_18] : memref<128x128xbf16, #tpu.memory_space<vmem>>, vector<128x128xbf16>
    %cst_19 = arith.constant dense<0.000000e+00> : vector<8x128xf32>
    %25 = tpu.matmul %23, %24, %cst_19 {dimension_numbers = #tpu.dot_dimension_numbers<[1], [0], [0], [1], [0, 0, 1, 1], [], []>} : vector<8x128xbf16>, vector<128x128xbf16>, vector<8x128xf32> -> vector<8x128xf32>
    %c0_20 = arith.constant 0 : index
    %c0_21 = arith.constant 0 : index
    %26 = vector.load %arg9[%c0_20, %c0_21] : memref<1x128xf32, #tpu.memory_space<vmem>>, vector<1x128xf32>
    %27 = vector.broadcast %26 : vector<1x128xf32> to vector<8x128xf32>
    %28 = arith.addf %25, %27 : vector<8x128xf32>
    %c0_22 = arith.constant 0 : index
    %c0_23 = arith.constant 0 : index
    %29 = vector.load %arg10[%c0_22, %c0_23] : memref<8x128xf32, #tpu.memory_space<vmem>>, vector<8x128xf32>
    tpu.vector_store %arg10[%c0_22, %c0_23], %28 {strides = array<i32>} : memref<8x128xf32, #tpu.memory_space<vmem>>, vector<8x128xf32>,
    return
  }
  func.func @transform_0(%arg0: i32) -> (i32, i32) {
    %c0_i32 = arith.constant 0 : i32
    %c0_i32_0 = arith.constant 0 : i32
    return %arg0, %c0_i32 : i32, i32
  }
  func.func @transform_1(%arg0: i32) -> (i32, i32) {
    %c0_i32 = arith.constant 0 : i32
    %c0_i32_0 = arith.constant 0 : i32
    %c0_i32_1 = arith.constant 0 : i32
    return %c0_i32, %c0_i32_0 : i32, i32
  }
  func.func @transform_2(%arg0: i32) -> (i32, i32) {
    %c0_i32 = arith.constant 0 : i32
    %c0_i32_0 = arith.constant 0 : i32
    %c0_i32_1 = arith.constant 0 : i32
    return %c0_i32, %c0_i32_0 : i32, i32
  }
  func.func @transform_3(%arg0: i32) -> (i32, i32) {
    %c0_i32 = arith.constant 0 : i32
    %c0_i32_0 = arith.constant 0 : i32
    %c0_i32_1 = arith.constant 0 : i32
    return %c0_i32, %c0_i32_0 : i32, i32
  }
  func.func @transform_4(%arg0: i32) -> (i32, i32) {
    %c0_i32 = arith.constant 0 : i32
    %c0_i32_0 = arith.constant 0 : i32
    %c0_i32_1 = arith.constant 0 : i32
    return %c0_i32, %c0_i32_0 : i32, i32
  }
  func.func @transform_5(%arg0: i32) -> (i32, i32) {
    %c0_i32 = arith.constant 0 : i32
    %c0_i32_0 = arith.constant 0 : i32
    %c0_i32_1 = arith.constant 0 : i32
    return %c0_i32, %c0_i32_0 : i32, i32
  }
  func.func @transform_6(%arg0: i32) -> (i32, i32) {
    %c0_i32 = arith.constant 0 : i32
    %c0_i32_0 = arith.constant 0 : i32
    %c0_i32_1 = arith.constant 0 : i32
    return %c0_i32, %c0_i32_0 : i32, i32
  }
  func.func @transform_7(%arg0: i32) -> (i32, i32) {
    %c0_i32 = arith.constant 0 : i32
    %c0_i32_0 = arith.constant 0 : i32
    %c0_i32_1 = arith.constant 0 : i32
    return %c0_i32, %c0_i32_0 : i32, i32
  }
  func.func @transform_8(%arg0: i32) -> (i32, i32) {
    %c0_i32 = arith.constant 0 : i32
    %c0_i32_0 = arith.constant 0 : i32
    %c0_i32_1 = arith.constant 0 : i32
    return %c0_i32, %c0_i32_0 : i32, i32
  }
  func.func @transform_9(%arg0: i32) -> (i32, i32) {
    %c0_i32 = arith.constant 0 : i32
    %c0_i32_0 = arith.constant 0 : i32
    return %arg0, %c0_i32 : i32, i32
  }
}

</mosaic_0001>

<bundles_post_ra>
// kernel: tpu_custom_call.1
= control target key start
LH: loop header
LB: loop body
LE: loop exit
PB: predicated region body
PF: predicated region fallthrough
CT: control target
= control target key end

     0   :  { %14 = vsyncpa [#allocation3], 0  ;;  %s1482_s0 = inlined_call_operand.hbm [shape: f32[8,64], index: 0, kind: input, shape index: {}]   ;;  %s1483_s1 = inlined_call_operand.hbm [shape: bf16[64,128], index: 1, kind: input, shape index: {}]   ;;  %s1484_s2 = inlined_call_operand.vmem [shape: f32[1,128], index: 2, kind: input, shape index: {}]   ;;  %s1485_s3 = inlined_call_operand.hbm [shape: bf16[128,512], index: 3, kind: input, shape index: {}]   ;;  %s1486_s4 = inlined_call_operand.vmem [shape: f32[1,512], index: 4, kind: input, shape index: {}]   ;;  %s1487_s5 = inlined_call_operand.hbm [shape: bf16[512,128], index: 5, kind: input, shape index: {}]   ;;  %s1488_s6 = inlined_call_operand.vmem [shape: f32[1,128], index: 6, kind: input, shape index: {}]   ;;  %s1489_s7 = inlined_call_operand.hbm [shape: bf16[128,128], index: 7, kind: input, shape index: {}]   ;;  %s1490_s8 = inlined_call_operand.vmem [shape: f32[1,128], index: 8, kind: input, shape index: {}]   ;;  %s1491_s9 = inlined_call_operand.hbm [shape: f32[8,128], index: 9, kind: output, shape index: {}]  }
   0x1   :  { %15 = vsyncpa [#allocation6], 0 }
   0x2   :  { %16 = vsyncpa [#allocation9], 0 }
   0x3   :  { %17 = vsyncpa [#allocation4], 0  ;;  %s1364_s30 = smov [#allocation5]  }
   0x4   :  { %s33_s10 = sshll.u32 %s1364_s30, 4  ;;  %s34_s10 = int_to_ptr.vmem [resolvable:$true] %s33_s10 }
   0x5   :  { %s1244_s11 = scalar_lea.vmem %s34_s10, 512  ;;  %p1249_p1 = scmp.lt.s32.totalorder %s34_s10, %s34_s10 }
   0x6   :  { %p1245_p0 = scmp.ne.s32.totalorder %s34_s10, %s1244_s11  ;;  %p1250_p2 = scmp.lt.s32.totalorder %s1244_s11, %s1244_s11 }
   0x8   :  { %p1251_p3 = por %p1250_p2, %p1249_p1 }
   0xa   :  { %p1252_p4 = pnand %p1251_p3, %p1245_p0 }
   0xc   :  { %1255 = shalt.err (!%p1252_p4)
}
   0xd   :  { %s1365_s12 = smov 64   ;;  %s1366_s13 = smov 4  }
   0xe   :  { %39 = dma.hbm_to_vmem [thread:$0]  %s1483_s1, 512, %s34_s10, [#allocation6], %s1365_s12, %s1365_s12, %s1366_s13  }
   0xf   :  { %s1367_s16 = smov [#allocation8]   ;;  %s1368_s18 = smov [#allocation2]  }
  0x10   :  { %s61_s17 = sshll.u32 %s1367_s16, 4  ;;  %s24_s19 = sshll.u32 %s1368_s18, 4  ;;  %s62_s17 = int_to_ptr.vmem [resolvable:$true] %s61_s17  ;;  %s25_s19 = int_to_ptr.vmem [resolvable:$true] %s24_s19 }
  0x11   :  { %s1264_s20 = scalar_lea.vmem %s62_s17, 4096  ;;  %p1269_p6 = scmp.lt.s32.totalorder %s62_s17, %s62_s17 }
  0x12   :  { %p1265_p5 = scmp.ne.s32.totalorder %s62_s17, %s1264_s20  ;;  %p1270_p7 = scmp.lt.s32.totalorder %s1264_s20, %s1264_s20 }
  0x14   :  { %p1271_p8 = por %p1270_p7, %p1269_p6 }
  0x16   :  { %p1272_p9 = pnand %p1271_p8, %p1265_p5 }
  0x18   :  { %1275 = shalt.err (!%p1272_p9)
}
  0x19   :  { %67 = dma.hbm_to_vmem [thread:$0]  %s1487_s5, 4096, %s62_s17, [#allocation9], %s1365_s12, %s1365_s12, %s1366_s13  }
  0x1a   :  { %s1284_s1 = scalar_lea.vmem %s25_s19, 128  ;;  %p1289_p11 = scmp.lt.s32.totalorder %s25_s19, %s25_s19 }
  0x1b   :  { %p1285_p10 = scmp.ne.s32.totalorder %s25_s19, %s1284_s1  ;;  %p1290_p12 = scmp.lt.s32.totalorder %s1284_s1, %s1284_s1 }
  0x1d   :  { %p1291_p13 = por %p1290_p12, %p1289_p11 }
  0x1f   :  { %p1292_p0 = pnand %p1291_p13, %p1285_p10 }
  0x21   :  { %1295 = shalt.err (!%p1292_p0)
}
  0x22   :  { %27 = dma.hbm_to_vmem [thread:$0]  %s1482_s0, 128, %s25_s19, [#allocation3]  }
  0x23   :  { %s1369_s25 = smov [#allocation7]  }
  0x24   :  { %s47_s26 = sshll.u32 %s1369_s25, 4  ;;  %s48_s26 = int_to_ptr.vmem [resolvable:$true] %s47_s26 }
  0x25   :  { %s1304_s27 = scalar_lea.vmem %s48_s26, 4096  ;;  %p1309_p2 = scmp.lt.s32.totalorder %s48_s26, %s48_s26 }
  0x26   :  { %p1305_p1 = scmp.ne.s32.totalorder %s48_s26, %s1304_s27  ;;  %p1310_p3 = scmp.lt.s32.totalorder %s1304_s27, %s1304_s27 }
  0x28   :  { %p1311_p4 = por %p1310_p3, %p1309_p2 }
  0x2a   :  { %p1312_p5 = pnand %p1311_p4, %p1305_p1 }
  0x2c   :  { %1315 = shalt.err (!%p1312_p5)
}
  0x2d   :  { %s1370_s5 = smov 256   ;;  %s1371_s28 = smov 16  }
  0x2e   :  { %53 = dma.hbm_to_vmem [thread:$0]  %s1485_s3, 4096, %s48_s26, [#allocation6], %s1370_s5, %s1370_s5, %s1371_s28  }
  0x2f   :  { %s1372_s10 = smov [#allocation10]  }
  0x30   :  { %s75_s11 = sshll.u32 %s1372_s10, 4  ;;  %s76_s11 = int_to_ptr.vmem [resolvable:$true] %s75_s11 }
  0x31   :  { %s1324_s0 = scalar_lea.vmem %s76_s11, 1024  ;;  %p1329_p7 = scmp.lt.s32.totalorder %s76_s11, %s76_s11 }
  0x32   :  { %p1325_p6 = scmp.ne.s32.totalorder %s76_s11, %s1324_s0  ;;  %p1330_p8 = scmp.lt.s32.totalorder %s1324_s0, %s1324_s0 }
  0x34   :  { %p1331_p9 = por %p1330_p8, %p1329_p7 }
  0x36   :  { %p1332_p10 = pnand %p1331_p9, %p1325_p6 }
  0x38   :  { %1335 = shalt.err (!%p1332_p10)
}
  0x39   :  { %81 = dma.hbm_to_vmem [thread:$0]  %s1489_s7, 1024, %s76_s11, [#allocation9], %s1365_s12, %s1365_s12, %s1366_s13  }
  0x3a   :  { %1356 = dma.done.wait [#allocation3], 128  }
  0x3b   :  { %1357 = vsyncadd [#allocation3], 4294967168 }
  0x3c   :  { %1358 = dma.done.wait [#allocation6], 4608  }
  0x3d   :  { %1359 = vsyncadd [#allocation6], 4294962688 }
  0x3e   :  { %1360 = dma.done.wait [#allocation9], 5120  }
  0x3f   :  { %1361 = vsyncadd [#allocation9], 4294962176  ;;  %v1373_v0 = vmov 0.0   ;;  %vm1374_vm0 = vmmov 0   ;;  %v1144_v1 = vld [vmem:[#allocation5 + $0x18] sm:$0xff]   ;;  %v1145_v2 = vld [vmem:[#allocation5 + $0x10] sm:$0xff]  }
  0x40   :  { %1099 = vmatprep.subr.bf16.mxu0 %v1373_v0  ;;  %1107 = vmatprep.mubr.msk.bf16.mxu0 %vm1374_vm0, %v1373_v0  ;;  %v1148_v3 = vld [vmem:[#allocation7 + $0xe4] ss:$16 sps:$4 sm:$0xff]   ;;  %v1146_v4 = vld [vmem:[#allocation5 + $0x8] sm:$0xff]   ;;  %v1153_v5 = vld [vmem:[#allocation7 + $0xe0] ss:$16 sps:$4 sm:$0xff]   ;;  %vm141_vm1 = vcmask 523264  }
  0x41   :  { %1100 = vmatpush3.bf16.msra.mxu0 %v1144_v1  ;;  %401 = vmatprep.subr.bf16.mxu1 %v1148_v3  ;;  %v1154_v6 = vld [vmem:[#allocation7 + $0xc4] ss:$16 sps:$4 sm:$0xff]   ;;  %v100_v8 = vld [vmem:[#allocation2] sm:$0xff]  ;;  %v1159_v9 = vld [vmem:[#allocation7 + $0xc0] ss:$16 sps:$4 sm:$0xff]   ;;  %v1375_v39 = vmov 0  }
  0x42   :  { %1101 = vmatprep.subr.bf16.mxu0 %v1373_v0  ;;  %v1147_v7 = vld [vmem:[#allocation5] sm:$0xff]   ;;  %402 = vmatpush1.bf16.msra.mxu1 %v1153_v5  ;;  %v1152_v11 = vld [vmem:[#allocation7 + $0xec] ss:$16 sps:$4 sm:$0xff]   ;;  %v101_v13 = vpack.c.bf16 %v100_v8, %v100_v8  ;;  %v1150_v15 = vld [vmem:[#allocation7 + $0xe8] ss:$16 sps:$4 sm:$0xff]   ;;  %s1376_s18 = smov [#allocation11]  }
  0x43   :  { %403 = vmatprep.subr.bf16.mxu1 %v1154_v6  ;;  %v1160_v10 = vld [vmem:[#allocation7 + $0xa4] ss:$16 sps:$4 sm:$0xff]   ;;  %v1165_v12 = vld [vmem:[#allocation7 + $0xa0] ss:$16 sps:$4 sm:$0xff]   ;;  %v1158_v16 = vld [vmem:[#allocation7 + $0xcc] ss:$16 sps:$4 sm:$0xff]   ;;  %433 = vmatprep.mubr.bf16.mxu1 %v1375_v39 }
  0x44   :  { %v1166_v14 = vld [vmem:[#allocation7 + $0x84] ss:$16 sps:$4 sm:$0xff]   ;;  %v1171_v17 = vld [vmem:[#allocation7 + $0x80] ss:$16 sps:$4 sm:$0xff]   ;;  %v1156_v19 = vld [vmem:[#allocation7 + $0xc8] ss:$16 sps:$4 sm:$0xff]  }
  0x45   :  { %1102 = vmatpush3.bf16.msra.mxu0 %v1145_v2  ;;  %v1172_v18 = vld [vmem:[#allocation7 + $0x64] ss:$16 sps:$4 sm:$0xff]   ;;  %v1164_v20 = vld [vmem:[#allocation7 + $0xac] ss:$16 sps:$4 sm:$0xff]   ;;  %v1177_v21 = vld [vmem:[#allocation7 + $0x60] ss:$16 sps:$4 sm:$0xff]  }
  0x46   :  { %1103 = vmatprep.subr.bf16.mxu0 %v1373_v0  ;;  %404 = vmatpush1.bf16.msra.mxu1 %v1159_v9  ;;  %v1178_v22 = vld [vmem:[#allocation7 + $0x44] ss:$16 sps:$4 sm:$0xff]   ;;  %v1162_v23 = vld [vmem:[#allocation7 + $0xa8] ss:$16 sps:$4 sm:$0xff]   ;;  %v1170_v24 = vld [vmem:[#allocation7 + $0x8c] ss:$16 sps:$4 sm:$0xff]  }
  0x47   :  { %405 = vmatprep.subr.bf16.mxu1 %v1160_v10  ;;  %v1183_v25 = vld [vmem:[#allocation7 + $0x40] ss:$16 sps:$4 sm:$0xff]   ;;  %v1184_v26 = vld [vmem:[#allocation7 + $0x24] ss:$16 sps:$4 sm:$0xff]   ;;  %v1168_v27 = vld [vmem:[#allocation7 + $0x88] ss:$16 sps:$4 sm:$0xff]  }
  0x48   :  { %v1176_v28 = vld [vmem:[#allocation7 + $0x6c] ss:$16 sps:$4 sm:$0xff]   ;;  %v1174_v29 = vld [vmem:[#allocation7 + $0x68] ss:$16 sps:$4 sm:$0xff]   ;;  %v1189_v34 = vld [vmem:[#allocation7 + $0x20] ss:$16 sps:$4 sm:$0xff]  }
  0x49   :  { %1104 = vmatpush3.bf16.msra.mxu0 %v1146_v4  ;;  %v1182_v30 = vld [vmem:[#allocation7 + $0x4c] ss:$16 sps:$4 sm:$0xff]   ;;  %v1180_v31 = vld [vmem:[#allocation7 + $0x48] ss:$16 sps:$4 sm:$0xff]   ;;  %v1190_v35 = vld [vmem:[#allocation7 + $0x4] ss:$16 sps:$4 sm:$0xff]  }
  0x4a   :  { %1105 = vmatprep.subr.bf16.mxu0 %v1373_v0  ;;  %406 = vmatpush1.bf16.msra.mxu1 %v1165_v12  ;;  %v1188_v32 = vld [vmem:[#allocation7 + $0x2c] ss:$16 sps:$4 sm:$0xff]   ;;  %v1186_v33 = vld [vmem:[#allocation7 + $0x28] ss:$16 sps:$4 sm:$0xff]   ;;  %v1195_v38 = vld [vmem:[#allocation7] ss:$16 sps:$4 sm:$0xff]  }
  0x4b   :  { %407 = vmatprep.subr.bf16.mxu1 %v1166_v14  ;;  %v1194_v36 = vld [vmem:[#allocation7 + $0xc] ss:$16 sps:$4 sm:$0xff]   ;;  %v1192_v37 = vld [vmem:[#allocation7 + $0x8] ss:$16 sps:$4 sm:$0xff]   ;;  %v1200_v51 = vld [vmem:[#allocation8 + $0x70] sm:$0xff]   ;;  %s950_s19 = sshll.u32 %s1376_s18, 4  ;;  %s951_s19 = int_to_ptr.vmem [resolvable:$true] %s950_s19 }
  0x4c   :  { %v1196_v40 = vld [vmem:[#allocation8 + $0x78] sm:$0xff]   ;;  %v1201_v52 = vld [vmem:[#allocation8 + $0xf0] sm:$0xff]   ;;  %v1204_v56 = vld [vmem:[#allocation8 + $0x68] sm:$0xff]   ;;  %p1341_p12 = scmp.lt.s32.totalorder %s951_s19, %s951_s19 }
  0x4d   :  { %1106 = vmatpush3.bf16.msra.mxu0 %v1147_v7  ;;  %v1197_v41 = vld [vmem:[#allocation8 + $0xf8] sm:$0xff]   ;;  %v1202_v54 = vld [vmem:[#allocation8 + $0x30] sm:$0xff]   ;;  %v1205_v57 = vld [vmem:[#allocation8 + $0xe8] sm:$0xff]  }
  0x4e   :  { %442 = vmatprep.subr.bf16.mxu0 %v1152_v11  ;;  %408 = vmatpush1.bf16.msra.mxu1 %v1171_v17  ;;  %v961_v42 = vld [vmem:[%s1484_s2] ss:$0 sm:$0xff]  ;;  %v1203_v55 = vld [vmem:[#allocation8 + $0xb0] sm:$0xff]   ;;  %v1206_v58 = vld [vmem:[#allocation8 + $0x28] sm:$0xff]   ;;  %v221_v17 = vlaneseq }
  0x4f   :  { %409 = vmatprep.subr.bf16.mxu1 %v1172_v18  ;;  %v1198_v48 = vld [vmem:[#allocation8 + $0x38] sm:$0xff]   ;;  %v1207_v59 = vld [vmem:[#allocation8 + $0xa8] sm:$0xff]   ;;  %v1208_v60 = vld [vmem:[#allocation8 + $0x60] sm:$0xff]  }
  0x50   :  { %1108 = vmatmul.mubr.msk.bf16.vlgmr.msra.gmra.mxu0 %vm141_vm1, %v101_v13  ;;  %v1199_v49 = vld [vmem:[#allocation8 + $0xb8] sm:$0xff]   ;;  %v1209_v61 = vld [vmem:[#allocation8 + $0xe0] sm:$0xff]   ;;  %v1216_v5 = vld [vmem:[#allocation8 + $0x50] sm:$0xff]   ;;  %v222_v18 = vshrl.u32 %v221_v17, 7 }
  0x51   :  { %443 = vmatpush1.bf16.msra.mxu0 %v1150_v15  ;;  %474 = vmatprep.mubr.bf16.mxu0 %v1375_v39  ;;  %v1210_v62 = vld [vmem:[#allocation8 + $0x20] sm:$0xff]   ;;  %v1212_v1 = vld [vmem:[#allocation8 + $0x58] sm:$0xff]   ;;  %v1217_v6 = vld [vmem:[#allocation8 + $0xd0] sm:$0xff]  }
  0x52   :  { %444 = vmatprep.subr.bf16.mxu0 %v1158_v16  ;;  %410 = vmatpush1.bf16.msra.mxu1 %v1177_v21  ;;  %v1211_v63 = vld [vmem:[#allocation8 + $0xa0] sm:$0xff]   ;;  %v1213_v2 = vld [vmem:[#allocation8 + $0xd8] sm:$0xff]   ;;  %v1218_v7 = vld [vmem:[#allocation8 + $0x10] sm:$0xff]  }
  0x53   :  { %411 = vmatprep.subr.bf16.mxu1 %v1178_v22  ;;  %v1214_v3 = vld [vmem:[#allocation8 + $0x18] sm:$0xff]   ;;  %v1219_v8 = vld [vmem:[#allocation8 + $0x90] sm:$0xff]   ;;  %v1220_v9 = vld [vmem:[#allocation8 + $0x48] sm:$0xff]   ;;  %v227_v22 = vsub.s32 1, %v222_v18 }
  0x54   :  { %v1215_v4 = vld [vmem:[#allocation8 + $0x98] sm:$0xff]   ;;  %v1221_v10 = vld [vmem:[#allocation8 + $0xc8] sm:$0xff]   ;;  %v1224_v13 = vld [vmem:[#allocation8 + $0x40] sm:$0xff]  }
  0x55   :  { %445 = vmatpush1.bf16.msra.mxu0 %v1156_v19  ;;  %v1222_v11 = vld [vmem:[#allocation8 + $0x8] sm:$0xff]   ;;  %v1225_v14 = vld [vmem:[#allocation8 + $0xc0] sm:$0xff]   ;;  %v223_v19 = vsub.s32 0, %v222_v18  ;;  %v219_v21 = vld [vmem:[%s1486_s4] sm:$0xf] }
  0x56   :  { %446 = vmatprep.subr.bf16.mxu0 %v1164_v20  ;;  %412 = vmatpush1.bf16.msra.mxu1 %v1183_v25  ;;  %v1223_v12 = vld [vmem:[#allocation8 + $0x88] sm:$0xff]   ;;  %v1226_v15 = vld [vmem:[#allocation8] sm:$0xff]   ;;  %v231_v20 = vsub.s32 2, %v222_v18 }
  0x57   :  { %413 = vmatprep.subr.bf16.mxu1 %v1184_v26  ;;  %v1227_v16 = vld [vmem:[#allocation8 + $0x80] sm:$0xff]   ;;  %v228_v26 = vrot.slane %v219_v21, %v227_v22 }
  0x58   :  { %v232_v25 = vrot.slane %v219_v21, %v231_v20 }
  0x59   :  { %447 = vmatpush1.bf16.msra.mxu0 %v1162_v23  ;;  %v235_v23 = vsub.s32 3, %v222_v18 }
  0x5a   :  { %448 = vmatprep.subr.bf16.mxu0 %v1170_v24  ;;  %414 = vmatpush1.bf16.msra.mxu1 %v1189_v34  ;;  %v224_v24 = vrot.slane %v219_v21, %v223_v19 }
  0x5b   :  { %415 = vmatprep.subr.bf16.mxu1 %v1190_v35 }
  0x5d   :  { %449 = vmatpush1.bf16.msra.mxu0 %v1168_v27  ;;  %v236_v27 = vrot.slane %v219_v21, %v235_v23 }
  0x5e   :  { %450 = vmatprep.subr.bf16.mxu0 %v1176_v28  ;;  %416 = vmatpush1.bf16.msra.mxu1 %v1195_v38 }
  0x5f   :  { %1046 = vmatprep.subr.bf16.mxu1 %v1196_v40  ;;  %v1228_v40 = vld [vmem:[#allocation10 + $0x38] sm:$0xff]  }
  0x61   :  { %451 = vmatpush1.bf16.msra.mxu0 %v1174_v29 }
  0x62   :  { %452 = vmatprep.subr.bf16.mxu0 %v1182_v30 }
  0x65   :  { %453 = vmatpush1.bf16.msra.mxu0 %v1180_v31 }
  0x66   :  { %454 = vmatprep.subr.bf16.mxu0 %v1188_v32 }
  0x69   :  { %455 = vmatpush1.bf16.msra.mxu0 %v1186_v33 }
  0x6a   :  { %456 = vmatprep.subr.bf16.mxu0 %v1194_v36 }
  0x6d   :  { %457 = vmatpush1.bf16.msra.mxu0 %v1192_v37 }
  0x6e   :  { %1068 = vmatprep.subr.bf16.mxu0 %v1197_v41 }
 0x110   :  { %v179_v43 = vpop.f32.mrf.mxu0 }
 0x111   :  { %v180_v44 = vadd.f32 %v961_v42, %v179_v43 }
 0x112   :  { %v1109_v45 = vpop.f32.mrf.mxu0 }
 0x113   :  { %v185_v46 = vmax.f32 %v180_v44, 0.0  ;;  %v1229_v45 = vld [vmem:[#allocation10 + $0x30] sm:$0xff]  }
 0x114   :  { %v182_v47 = vpop.f32.mrf.mxu0 }
 0x115   :  { %v186_v50 = vpack.c.bf16 %v185_v46, %v185_v46  ;;  %v1230_v46 = vld [vmem:[#allocation10 + $0x28] sm:$0xff]   ;;  %v1231_v47 = vld [vmem:[#allocation10 + $0x20] sm:$0xff]  }
 0x116   :  { %v1110_v53 = vpop.f32.mrf.mxu0 }
 0x117   :  { %434 = vmatmul.mubr.bf16.vlgmr.msra.gmra.mxu1 %v186_v50  ;;  %475 = vmatmul.mubr.bf16.vlgmr.msra.gmra.mxu0 %v186_v50  ;;  %v1234_v50 = vld [vmem:[#allocation10 + $0x8] sm:$0xff]  }
 0x118   :  { %1047 = vmatpush3.bf16.msra.mxu1 %v1198_v48  ;;  %1069 = vmatpush3.bf16.msra.mxu0 %v1199_v49  ;;  %v1232_v48 = vld [vmem:[#allocation10 + $0x18] sm:$0xff]   ;;  %v1233_v49 = vld [vmem:[#allocation10 + $0x10] sm:$0xff]  }
 0x119   :  { %1048 = vmatprep.subr.bf16.mxu1 %v1200_v51  ;;  %1070 = vmatprep.subr.bf16.mxu0 %v1201_v52  ;;  %v1235_v51 = vld [vmem:[#allocation10] sm:$0xff]  }
 0x11c   :  { %1049 = vmatpush3.bf16.msra.mxu1 %v1202_v54  ;;  %1071 = vmatpush3.bf16.msra.mxu0 %v1203_v55  ;;  %v999_v54 = vld [vmem:[%s1488_s6] ss:$0 sm:$0xff]  ;;  %s1336_s6 = scalar_lea.vmem %s951_s19, 128 }
 0x11d   :  { %1050 = vmatprep.subr.bf16.mxu1 %v1204_v56  ;;  %1072 = vmatprep.subr.bf16.mxu0 %v1205_v57  ;;  %p1337_p11 = scmp.ne.s32.totalorder %s951_s19, %s1336_s6  ;;  %p1342_p13 = scmp.lt.s32.totalorder %s1336_s6, %s1336_s6 }
 0x11f   :  { %p1343_p0 = por %p1342_p13, %p1341_p12 }
 0x120   :  { %1051 = vmatpush3.bf16.msra.mxu1 %v1206_v58  ;;  %1073 = vmatpush3.bf16.msra.mxu0 %v1207_v59 }
 0x121   :  { %1052 = vmatprep.subr.bf16.mxu1 %v1208_v60  ;;  %1074 = vmatprep.subr.bf16.mxu0 %v1209_v61  ;;  %p1344_p1 = pnand %p1343_p0, %p1337_p11 }
 0x124   :  { %1053 = vmatpush3.bf16.msra.mxu1 %v1210_v62  ;;  %1075 = vmatpush3.bf16.msra.mxu0 %v1211_v63 }
 0x125   :  { %1054 = vmatprep.subr.bf16.mxu1 %v1212_v1  ;;  %1076 = vmatprep.subr.bf16.mxu0 %v1213_v2 }
 0x128   :  { %1055 = vmatpush3.bf16.msra.mxu1 %v1214_v3  ;;  %1077 = vmatpush3.bf16.msra.mxu0 %v1215_v4  ;;  %v1032_v3 = vld [vmem:[%s1490_s8] ss:$0 sm:$0xff] }
 0x129   :  { %1056 = vmatprep.subr.bf16.mxu1 %v1216_v5  ;;  %1078 = vmatprep.subr.bf16.mxu0 %v1217_v6 }
 0x12c   :  { %1057 = vmatpush3.bf16.msra.mxu1 %v1218_v7  ;;  %1079 = vmatpush3.bf16.msra.mxu0 %v1219_v8 }
 0x12d   :  { %1058 = vmatprep.subr.bf16.mxu1 %v1220_v9  ;;  %1080 = vmatprep.subr.bf16.mxu0 %v1221_v10 }
 0x130   :  { %1059 = vmatpush3.bf16.msra.mxu1 %v1222_v11  ;;  %1081 = vmatpush3.bf16.msra.mxu0 %v1223_v12 }
 0x131   :  { %1060 = vmatprep.subr.bf16.mxu1 %v1224_v13  ;;  %1082 = vmatprep.subr.bf16.mxu0 %v1225_v14 }
 0x134   :  { %1061 = vmatpush3.bf16.msra.mxu1 %v1226_v15  ;;  %1083 = vmatpush3.bf16.msra.mxu0 %v1227_v16 }
 0x135   :  { %1111 = vmatprep.subr.bf16.mxu1 %v1373_v0 }
 0x1d7   :  { %v435_v28 = vpop.f32.mrf.mxu1  ;;  %v476_v29 = vpop.f32.mrf.mxu0 }
 0x1d8   :  { %v436_v30 = vadd.f32 %v435_v28, %v224_v24  ;;  %v477_v31 = vadd.f32 %v476_v29, %v232_v25 }
 0x1d9   :  { %v437_v32 = vpop.f32.mrf.mxu1  ;;  %v478_v33 = vpop.f32.mrf.mxu0 }
 0x1da   :  { %v438_v34 = vadd.f32 %v437_v32, %v228_v26  ;;  %v479_v35 = vadd.f32 %v478_v33, %v236_v27  ;;  %v483_v41 = vpack.c.bf16 %v436_v30, %v436_v30  ;;  %v485_v42 = vpack.c.bf16 %v477_v31, %v477_v31 }
 0x1db   :  { %v439_v36 = vpop.f32.mrf.mxu1  ;;  %v480_v37 = vpop.f32.mrf.mxu0 }
 0x1dc   :  { %v484_v38 = vpack.c.bf16 %v438_v34, %v438_v34  ;;  %v486_v39 = vpack.c.bf16 %v479_v35, %v479_v35 }
 0x1dd   :  { %v440_v43 = vpop.f32.mrf.mxu1  ;;  %v481_v44 = vpop.f32.mrf.mxu0 }
 0x1de   :  { %782 = vmatprep.mubr.bf16.mxu1 %v484_v38  ;;  %822 = vmatprep.mubr.bf16.mxu0 %v486_v39 }
 0x1df   :  { %783 = vmatmul.mubr.bf16.vlgmr.msra.gmra.mxu1 %v483_v41  ;;  %823 = vmatmul.mubr.bf16.vlgmr.msra.gmra.mxu0 %v485_v42 }
 0x1e0   :  { %1112 = vmatpush3.bf16.msra.mxu1 %v1228_v40  ;;  %1127 = vmatprep.mubr.msk.bf16.mxu1 %vm1374_vm0, %v1373_v0 }
 0x1e1   :  { %1113 = vmatprep.subr.bf16.mxu1 %v1373_v0 }
 0x1e4   :  { %1114 = vmatpush3.bf16.msra.mxu1 %v1229_v45 }
 0x1e5   :  { %1115 = vmatprep.subr.bf16.mxu1 %v1373_v0 }
 0x1e8   :  { %1116 = vmatpush3.bf16.msra.mxu1 %v1230_v46 }
 0x1e9   :  { %1117 = vmatprep.subr.bf16.mxu1 %v1373_v0 }
 0x1ec   :  { %1118 = vmatpush3.bf16.msra.mxu1 %v1231_v47 }
 0x1ed   :  { %1119 = vmatprep.subr.bf16.mxu1 %v1373_v0 }
 0x1f0   :  { %1120 = vmatpush3.bf16.msra.mxu1 %v1232_v48 }
 0x1f1   :  { %1121 = vmatprep.subr.bf16.mxu1 %v1373_v0 }
 0x1f4   :  { %1122 = vmatpush3.bf16.msra.mxu1 %v1233_v49 }
 0x1f5   :  { %1123 = vmatprep.subr.bf16.mxu1 %v1373_v0 }
 0x1f8   :  { %1124 = vmatpush3.bf16.msra.mxu1 %v1234_v50 }
 0x1f9   :  { %1125 = vmatprep.subr.bf16.mxu1 %v1373_v0 }
 0x1fc   :  { %1126 = vmatpush3.bf16.msra.mxu1 %v1235_v51 }
 0x29f   :  { %v1062_v52 = vpop.f32.mrf.mxu1  ;;  %v1084_v53 = vpop.f32.mrf.mxu0 }
 0x2a1   :  { %v1063_v55 = vpop.f32.mrf.mxu1  ;;  %v1085_v56 = vpop.f32.mrf.mxu0 }
 0x2a2   :  { %v1064_v57 = vadd.f32 %v1063_v55, %v1062_v52  ;;  %v1086_v61 = vadd.f32 %v1085_v56, %v1084_v53 }
 0x2a3   :  { %v1065_v58 = vpop.f32.mrf.mxu1  ;;  %v1087_v59 = vpop.f32.mrf.mxu0 }
 0x2a4   :  { %v785_v60 = vadd.f32 %v1064_v57, %v999_v54 }
 0x2a5   :  { %v1066_v62 = vpop.f32.mrf.mxu1  ;;  %v1088_v63 = vpop.f32.mrf.mxu0 }
 0x2a6   :  { %v825_v1 = vadd.f32 %v1086_v61, %v785_v60 }
 0x2a8   :  { %v830_v2 = vmax.f32 %v825_v1, 0.0 }
 0x2aa   :  { %v831_v0 = vpack.c.bf16 %v830_v2, %v830_v2 }
 0x2ac   :  { %1128 = vmatmul.mubr.bf16.vlgmr.msra.gmra.mxu1 %v831_v0 }
 0x36c   :  { %v937_v4 = vpop.f32.mrf.mxu1 }
 0x36d   :  { %v938_v5 = vadd.f32 %v1032_v3, %v937_v4 }
 0x36e   :  { %v1129_v6 = vpop.f32.mrf.mxu1 }
 0x36f   :  { %943 = vst [vmem:[#allocation11] sm:$0xff] %v938_v5 }
 0x370   :  { %v940_v7 = vpop.f32.mrf.mxu1 }
 0x371   :  { %1347 = shalt.err (!%p1344_p1)
}
 0x372   :  { %953 = dma.vmem_to_hbm [thread:$0]  %s951_s19, 128, %s1491_s9, [#allocation4]   ;;  %v1130_v8 = vpop.f32.mrf.mxu1 }
 0x373   :  { %1362 = dma.done.wait [#allocation4], 128  }
 0x374   :  { %1363 = vsyncadd [#allocation4], 4294967168 }
 0x375   :  { %957 = vsyncpa [#allocation3], 1 }
 0x376   :  { %958 = vsyncpa [#allocation6], 1 }
 0x377   :  { %959 = vsyncpa [#allocation9], 1 }
 0x378   :  { %960 = vsyncpa [#allocation4], 1 }

</bundles_post_ra>
